<compile_context>
chip_gen: v5e
topology: v5e:2x2
jax: 0.10.0
libtpu: 0.0.40
codegen_flags: <defaults>
</compile_context>

<pallas_src>
import jax
import jax.numpy as jnp
from jax.experimental import pallas as pl
from jax.experimental.pallas import tpu as pltpu


# ---------------------------------------------------------------------------
# Kernels
# ---------------------------------------------------------------------------
def _fc_split_kernel_singlek(x_ref, wm_ref, wl_ref, bm_ref, mean_ref, logvar_ref):
    """Whole K resident: one MXU pass per output, epilogue fused, no scratch."""
    x = x_ref[...]
    pre_m = jnp.dot(x, wm_ref[...], preferred_element_type=jnp.float32)
    pre_l = jnp.dot(x, wl_ref[...], preferred_element_type=jnp.float32)
    pre_m = pre_m + bm_ref[...].astype(jnp.float32)          # (tm,tn)+(1,tn)
    mean_ref[...] = jax.nn.sigmoid(pre_m).astype(mean_ref.dtype)
    # nn.Hardtanh(min_val=-4.5, max_val=0.0)
    logvar_ref[...] = jnp.clip(pre_l, -4.5, 0.0).astype(logvar_ref.dtype)


def _fc_split_kernel_multik(x_ref, wm_ref, wl_ref, bm_ref, mean_ref, logvar_ref,
                            acc_m, acc_l):
    """K split over the innermost ('arbitrary') grid axis with f32 accumulators."""
    k = pl.program_id(2)

    @pl.when(k == 0)
    def _():
        acc_m[...] = jnp.zeros_like(acc_m)
        acc_l[...] = jnp.zeros_like(acc_l)

    x = x_ref[...]
    acc_m[...] += jnp.dot(x, wm_ref[...], preferred_element_type=jnp.float32)
    acc_l[...] += jnp.dot(x, wl_ref[...], preferred_element_type=jnp.float32)

    @pl.when(k == pl.num_programs(2) - 1)
    def _():
        pre_m = acc_m[...] + bm_ref[...].astype(jnp.float32)
        mean_ref[...] = jax.nn.sigmoid(pre_m).astype(mean_ref.dtype)
        logvar_ref[...] = jnp.clip(acc_l[...], -4.5, 0.0).astype(logvar_ref.dtype)


# ---------------------------------------------------------------------------
# Wrapper helpers
# ---------------------------------------------------------------------------
def _round_up(v, m):
    return ((v + m - 1) // m) * m


def _divisor_tile(dim, cap, align):
    """Largest divisor of `dim` that is a multiple of `align` and <= cap.
    Assumes `dim` is itself a multiple of `align`."""
    best = align
    t = align
    limit = min(dim, cap)
    while t <= limit:
        if dim % t == 0:
            best = t
        t += align
    return best


def prepare_fc_split_params(w_mean, b_mean, w_logvar, *, mxu_dtype=jnp.bfloat16):
    """One-time (per set of weights) layout / dtype preparation.

    Transposes the PyTorch-style (out, in) weights into (K, N) MXU layout, pads
    K and N up to multiples of 128 (zero padding -> no effect on the dot, keeps
    the output path lane-dense), and casts to the MXU input dtype.  Call once
    and reuse across forward passes so no per-call transpose traffic remains.
    """
    out_size, in_size = w_mean.shape
    k_pad = _round_up(in_size, 128)
    n_pad = _round_up(out_size, 128)

    def prep_w(w):
        wt = jnp.transpose(w)                                            # (K, N)
        wt = jnp.pad(wt, ((0, k_pad - in_size), (0, n_pad - out_size)))
        return wt.astype(mxu_dtype)

    bias = jnp.pad(b_mean, (0, n_pad - out_size)).reshape(1, n_pad).astype(jnp.float32)
    return dict(wm=prep_w(w_mean), wl=prep_w(w_logvar), bm=bias,
                in_size=in_size, out_size=out_size,
                k_pad=k_pad, n_pad=n_pad, mxu_dtype=mxu_dtype)


def fc_layer_split_forward(x, params, *, tm_cap=256, tn_cap=512,
                           vmem_budget=40 * 2**20):
    """x: (..., in_size); params: output of prepare_fc_split_params."""
    orig_shape = x.shape
    in_size, out_size = params["in_size"], params["out_size"]
    assert orig_shape[-1] == in_size
    K_pad, N_pad = params["k_pad"], params["n_pad"]
    mxu_dtype = params["mxu_dtype"]
    out_dtype = x.dtype

    M = 1
    for d in orig_shape[:-1]:
        M *= d
    M_pad = _round_up(max(M, 1), 8)

    x2 = x.reshape(M, in_size).astype(mxu_dtype)
    x2 = jnp.pad(x2, ((0, M_pad - M), (0, K_pad - in_size)))

    # --- tile selection -----------------------------------------------------
    tm = _divisor_tile(M_pad, tm_cap, 8)
    tn = _divisor_tile(N_pad, tn_cap, 128)

    # v7x has 2 TensorCores: make sure the parallel (i, j) grid has >= 2 blocks
    # when N allows it, while keeping tn a lane-dense multiple of 128.
    while ((M_pad // tm) * (N_pad // tn) < 2 and tn >= 256
           and (tn // 2) % 128 == 0 and N_pad % (tn // 2) == 0):
        tn //= 2

    in_b = jnp.dtype(mxu_dtype).itemsize
    out_b = jnp.dtype(out_dtype).itemsize

    def vmem_bytes(tk, with_acc):
        b = 2 * tm * tk * in_b            # x tile, double buffered
        b += 2 * 2 * tk * tn * in_b       # two weight tiles, double buffered
        b += 2 * 1 * tn * 4               # bias tile
        b += 2 * 2 * tm * tn * out_b      # two output tiles, double buffered
        if with_acc:
            b += 2 * tm * tn * 4          # two f32 accumulators
        return b

    # Prefer the whole K in one block (no reduction axis, no accumulator RMW);
    # fall back to a k grid axis only when the working set exceeds the budget.
    tk = K_pad
    single_k = vmem_bytes(tk, with_acc=False) <= vmem_budget
    if not single_k:
        tk = 128
        t = 128
        while t <= K_pad:
            if K_pad % t == 0 and vmem_bytes(t, with_acc=True) <= vmem_budget:
                tk = t
            t += 128

    est = vmem_bytes(tk, with_acc=not single_k)
    # Explicit scoped-VMEM limit: above the 16 MiB v5e default, below v7x's
    # 64 MiB physical capacity.
    vmem_limit = int(min(48 * 2**20, max(32 * 2**20, int(1.5 * est))))

    out_shapes = (jax.ShapeDtypeStruct((M_pad, N_pad), out_dtype),
                  jax.ShapeDtypeStruct((M_pad, N_pad), out_dtype))
    cost = pl.CostEstimate(
        flops=2 * 2 * M_pad * N_pad * K_pad,
        transcendentals=M_pad * N_pad,
        bytes_accessed=(M_pad * K_pad * in_b + 2 * K_pad * N_pad * in_b
                        + N_pad * 4 + 2 * M_pad * N_pad * out_b))

    if single_k:
        grid = (M_pad // tm, N_pad // tn)
        mean2, logvar2 = pl.pallas_call(
            _fc_split_kernel_singlek,
            out_shape=out_shapes,
            grid_spec=pltpu.PrefetchScalarGridSpec(
                num_scalar_prefetch=0,
                grid=grid,
                in_specs=[
                    pl.BlockSpec((tm, K_pad), lambda i, j: (i, 0)),   # x tile
                    pl.BlockSpec((K_pad, tn), lambda i, j: (0, j)),   # W_mean^T tile
                    pl.BlockSpec((K_pad, tn), lambda i, j: (0, j)),   # W_logvar^T tile
                    pl.BlockSpec((1, tn), lambda i, j: (0, j)),       # bias tile
                ],
                out_specs=[
                    pl.BlockSpec((tm, tn), lambda i, j: (i, j)),
                    pl.BlockSpec((tm, tn), lambda i, j: (i, j)),
                ],
            ),
            compiler_params=pltpu.CompilerParams(
                dimension_semantics=("parallel", "parallel"),
                vmem_limit_bytes=vmem_limit),
            cost_estimate=cost,
        )(x2, params["wm"], params["wl"], params["bm"])
    else:
        grid = (M_pad // tm, N_pad // tn, K_pad // tk)
        mean2, logvar2 = pl.pallas_call(
            _fc_split_kernel_multik,
            out_shape=out_shapes,
            grid_spec=pltpu.PrefetchScalarGridSpec(
                num_scalar_prefetch=0,
                grid=grid,
                in_specs=[
                    pl.BlockSpec((tm, tk), lambda i, j, k: (i, k)),
                    pl.BlockSpec((tk, tn), lambda i, j, k: (k, j)),
                    pl.BlockSpec((tk, tn), lambda i, j, k: (k, j)),
                    pl.BlockSpec((1, tn), lambda i, j, k: (0, j)),
                ],
                out_specs=[
                    pl.BlockSpec((tm, tn), lambda i, j, k: (i, j)),
                    pl.BlockSpec((tm, tn), lambda i, j, k: (i, j)),
                ],
                scratch_shapes=[pltpu.VMEM((tm, tn), jnp.float32),
                                pltpu.VMEM((tm, tn), jnp.float32)],
            ),
            compiler_params=pltpu.CompilerParams(
                dimension_semantics=("parallel", "parallel", "arbitrary"),
                vmem_limit_bytes=vmem_limit),
            cost_estimate=cost,
        )(x2, params["wm"], params["wl"], params["bm"])

    out_shape = orig_shape[:-1] + (out_size,)
    mean = mean2[:M, :out_size].reshape(out_shape)
    logvar = logvar2[:M, :out_size].reshape(out_shape)
    return mean, logvar


# ---------------------------------------------------------------------------
# Self-test
# ---------------------------------------------------------------------------
if __name__ == "__main__":
    # Small shapes consistent with the module: batch=2, in_size=32, out_size=16.
    B, IN, OUT = 2, 32, 16
    key = jax.random.PRNGKey(0)
    kx, kwm, kbm, kwl = jax.random.split(key, 4)

    stdv = 1.0 / (IN ** 0.5)
    x = jax.random.normal(kx, (B, IN), dtype=jnp.float32)
    w_mean = jax.random.uniform(kwm, (OUT, IN), jnp.float32, -stdv, stdv)
    b_mean = jax.random.uniform(kbm, (OUT,), jnp.float32, -stdv, stdv)
    w_logvar = jax.random.uniform(kwl, (OUT, IN), jnp.float32, -stdv, stdv)

    # One-time weight layout / dtype preparation (hoisted out of the hot path).
    params = prepare_fc_split_params(w_mean, b_mean, w_logvar)

    mean_out, logvar_out = fc_layer_split_forward(x, params)
    mean_out = jax.block_until_ready(mean_out)
    logvar_out = jax.block_until_ready(logvar_out)

    # Reference mirroring the kernel's precision policy: bf16 MXU operands,
    # f32 accumulation / epilogue.
    xb = x.astype(jnp.bfloat16).astype(jnp.float32)
    wmb = w_mean.astype(jnp.bfloat16).astype(jnp.float32)
    wlb = w_logvar.astype(jnp.bfloat16).astype(jnp.float32)
    ref_mean = jax.nn.sigmoid(xb @ wmb.T + b_mean)
    ref_logvar = jnp.clip(xb @ wlb.T, -4.5, 0.0)

    assert mean_out.shape == (B, OUT) and logvar_out.shape == (B, OUT)
    assert jnp.allclose(mean_out, ref_mean, atol=2e-3, rtol=2e-3), "mean mismatch"
    assert jnp.allclose(logvar_out, ref_logvar, atol=2e-3, rtol=2e-3), "logvar mismatch"

    # Loose sanity check against the full-f32 PyTorch-equivalent reference.
    ref_mean_f32 = jax.nn.sigmoid(x @ w_mean.T + b_mean)
    ref_logvar_f32 = jnp.clip(x @ w_logvar.T, -4.5, 0.0)
    assert jnp.allclose(mean_out, ref_mean_f32, atol=2e-2, rtol=2e-2), "mean f32 drift"
    assert jnp.allclose(logvar_out, ref_logvar_f32, atol=2e-2, rtol=2e-2), "logvar f32 drift"

    print("KERNEL_OK")
</pallas_src>

<mosaic_0001>
module attributes {stable_mosaic.version = 11 : i64} {
  func.func @_fc_split_kernel_singlek(%arg0: i32, %arg1: i32, %arg2: memref<8x128xbf16, #tpu.memory_space<vmem>>, %arg3: memref<128x128xbf16, #tpu.memory_space<vmem>>, %arg4: memref<128x128xbf16, #tpu.memory_space<vmem>>, %arg5: memref<1x128xf32, #tpu.memory_space<vmem>>, %arg6: memref<8x128xf32, #tpu.memory_space<vmem>>, %arg7: memref<8x128xf32, #tpu.memory_space<vmem>>) attributes {dimension_semantics = [#tpu.dimension_semantics<parallel>, #tpu.dimension_semantics<parallel>], iteration_bounds = array<i64: 1, 1>, scalar_prefetch = 0 : i64, scratch_operands = 0 : i64, tpu.core_type = #tpu.core_type<tc>, window_params = [{transform_indices = @transform_0, window_bounds = array<i64: 8, 128>}, {transform_indices = @transform_1, window_bounds = array<i64: 128, 128>}, {transform_indices = @transform_2, window_bounds = array<i64: 128, 128>}, {transform_indices = @transform_3, window_bounds = array<i64: 1, 128>}, {transform_indices = @transform_4, window_bounds = array<i64: 8, 128>}, {transform_indices = @transform_5, window_bounds = array<i64: 8, 128>}]} {
    %c0 = arith.constant 0 : index
    %c0_0 = arith.constant 0 : index
    %0 = vector.load %arg2[%c0, %c0_0] : memref<8x128xbf16, #tpu.memory_space<vmem>>, vector<8x128xbf16>
    %c0_1 = arith.constant 0 : index
    %c0_2 = arith.constant 0 : index
    %1 = vector.load %arg3[%c0_1, %c0_2] : memref<128x128xbf16, #tpu.memory_space<vmem>>, vector<128x128xbf16>
    %cst = arith.constant dense<0.000000e+00> : vector<8x128xf32>
    %2 = tpu.matmul %0, %1, %cst {dimension_numbers = #tpu.dot_dimension_numbers<[1], [0], [0], [1], [0, 0, 1, 1], [], []>} : vector<8x128xbf16>, vector<128x128xbf16>, vector<8x128xf32> -> vector<8x128xf32>
    %c0_3 = arith.constant 0 : index
    %c0_4 = arith.constant 0 : index
    %3 = vector.load %arg4[%c0_3, %c0_4] : memref<128x128xbf16, #tpu.memory_space<vmem>>, vector<128x128xbf16>
    %cst_5 = arith.constant dense<0.000000e+00> : vector<8x128xf32>
    %4 = tpu.matmul %0, %3, %cst_5 {dimension_numbers = #tpu.dot_dimension_numbers<[1], [0], [0], [1], [0, 0, 1, 1], [], []>} : vector<8x128xbf16>, vector<128x128xbf16>, vector<8x128xf32> -> vector<8x128xf32>
    %c0_6 = arith.constant 0 : index
    %c0_7 = arith.constant 0 : index
    %5 = vector.load %arg5[%c0_6, %c0_7] : memref<1x128xf32, #tpu.memory_space<vmem>>, vector<1x128xf32>
    %6 = vector.broadcast %5 : vector<1x128xf32> to vector<8x128xf32>
    %7 = arith.addf %2, %6 : vector<8x128xf32>
    %8 = arith.negf %7 : vector<8x128xf32>
    %9 = math.exp %8 : vector<8x128xf32>
    %cst_8 = arith.constant 1.000000e+00 : f32
    %10 = vector.broadcast %cst_8 : f32 to vector<8x128xf32>
    %11 = arith.addf %10, %9 : vector<8x128xf32>
    %12 = arith.divf %10, %11 : vector<8x128xf32>
    %c0_9 = arith.constant 0 : index
    %c0_10 = arith.constant 0 : index
    %13 = vector.load %arg6[%c0_9, %c0_10] : memref<8x128xf32, #tpu.memory_space<vmem>>, vector<8x128xf32>
    tpu.vector_store %arg6[%c0_9, %c0_10], %12 {strides = array<i32>} : memref<8x128xf32, #tpu.memory_space<vmem>>, vector<8x128xf32>,
    %cst_11 = arith.constant -4.500000e+00 : f32
    %cst_12 = arith.constant 0.000000e+00 : f32
    %14 = vector.broadcast %cst_11 : f32 to vector<8x128xf32>
    %15 = arith.maximumf %14, %4 : vector<8x128xf32>
    %16 = vector.broadcast %cst_12 : f32 to vector<8x128xf32>
    %17 = arith.minimumf %16, %15 : vector<8x128xf32>
    %c0_13 = arith.constant 0 : index
    %c0_14 = arith.constant 0 : index
    %18 = vector.load %arg7[%c0_13, %c0_14] : memref<8x128xf32, #tpu.memory_space<vmem>>, vector<8x128xf32>
    tpu.vector_store %arg7[%c0_13, %c0_14], %17 {strides = array<i32>} : memref<8x128xf32, #tpu.memory_space<vmem>>, vector<8x128xf32>,
    return
  }
  func.func @transform_0(%arg0: i32, %arg1: i32) -> (i32, i32) {
    %c0_i32 = arith.constant 0 : i32
    %c0_i32_0 = arith.constant 0 : i32
    return %arg0, %c0_i32 : i32, i32
  }
  func.func @transform_1(%arg0: i32, %arg1: i32) -> (i32, i32) {
    %c0_i32 = arith.constant 0 : i32
    %c0_i32_0 = arith.constant 0 : i32
    return %c0_i32, %arg1 : i32, i32
  }
  func.func @transform_2(%arg0: i32, %arg1: i32) -> (i32, i32) {
    %c0_i32 = arith.constant 0 : i32
    %c0_i32_0 = arith.constant 0 : i32
    return %c0_i32, %arg1 : i32, i32
  }
  func.func @transform_3(%arg0: i32, %arg1: i32) -> (i32, i32) {
    %c0_i32 = arith.constant 0 : i32
    %c0_i32_0 = arith.constant 0 : i32
    return %c0_i32, %arg1 : i32, i32
  }
  func.func @transform_4(%arg0: i32, %arg1: i32) -> (i32, i32) {
    %c0_i32 = arith.constant 0 : i32
    return %arg0, %arg1 : i32, i32
  }
  func.func @transform_5(%arg0: i32, %arg1: i32) -> (i32, i32) {
    %c0_i32 = arith.constant 0 : i32
    return %arg0, %arg1 : i32, i32
  }
}

</mosaic_0001>

<bundles_post_ra>
// kernel: tpu_custom_call.1
= control target key start
LH: loop header
LB: loop body
LE: loop exit
PB: predicated region body
PF: predicated region fallthrough
CT: control target
= control target key end

     0   :  { %11 = vsyncpa [#allocation3], 0  ;;  %s558_s0 = inlined_call_operand.hbm [shape: bf16[8,128], index: 0, kind: input, shape index: {}]   ;;  %s559_s1 = inlined_call_operand.hbm [shape: bf16[128,128], index: 1, kind: input, shape index: {}]   ;;  %s560_s2 = inlined_call_operand.hbm [shape: bf16[128,128], index: 2, kind: input, shape index: {}]   ;;  %s561_s3 = inlined_call_operand.vmem [shape: f32[1,128], index: 3, kind: input, shape index: {}]   ;;  %s562_s4 = inlined_call_operand.hbm [shape: f32[8,128], index: 4, kind: output, shape index: {0}]   ;;  %s563_s5 = inlined_call_operand.hbm [shape: f32[8,128], index: 5, kind: output, shape index: {1}]  }
   0x1   :  { %12 = vsyncpa [#allocation6], 0 }
   0x2   :  { %13 = vsyncpa [#allocation4], 0  ;;  %s30_s20 = sshll.u32 %s559_s1, 4  ;;  %s31_s20 = int_to_ptr.hbm [resolvable:$true] %s30_s20 }
   0x3   :  { %14 = vsyncpa [#allocation10], 0  ;;  %s503_s21 = smov [#allocation5]   ;;  %s20_s25 = sshll.u32 %s558_s0, 4  ;;  %s21_s25 = int_to_ptr.hbm [resolvable:$true] %s20_s25 }
   0x4   :  { %s32_s22 = sshll.u32 %s503_s21, 4  ;;  %s504_s26 = smov 64   ;;  %s33_s22 = int_to_ptr.vmem [resolvable:$true] %s32_s22 }
   0x5   :  { %s505_s27 = smov 4   ;;  %s506_s28 = smov [#allocation2]  }
   0x6   :  { %38 = dma.hbm_to_vmem [thread:$0]  %s31_s20, 1024, %s33_s22, [#allocation6], %s504_s26, %s504_s26, %s505_s27  }
   0x7   :  { %s22_s29 = sshll.u32 %s506_s28, 4  ;;  %s43_s7 = sshll.u32 %s560_s2, 4  ;;  %s23_s29 = int_to_ptr.vmem [resolvable:$true] %s22_s29  ;;  %s44_s7 = int_to_ptr.hbm [resolvable:$true] %s43_s7 }
   0x8   :  { %25 = dma.hbm_to_vmem [thread:$0]  %s21_s25, 64, %s23_s29, [#allocation3]  }
   0x9   :  { %s507_s1 = smov [#allocation7]  }
   0xa   :  { %s45_s8 = sshll.u32 %s507_s1, 4  ;;  %s46_s8 = int_to_ptr.vmem [resolvable:$true] %s45_s8 }
   0xb   :  { %51 = dma.hbm_to_vmem [thread:$0]  %s44_s7, 1024, %s46_s8, [#allocation6], %s504_s26, %s504_s26, %s505_s27  }
   0xc   :  { %495 = dma.done.wait [#allocation3], 64  }
   0xd   :  { %496 = vsyncadd [#allocation3], 4294967232 }
   0xe   :  { %497 = dma.done.wait [#allocation6], 2048  }
   0xf   :  { %498 = vsyncadd [#allocation6], 4294965248  ;;  %v354_v0 = vld [vmem:[#allocation5 + $0x38] sm:$0xff]  ;;  %v353_v2 = vld [vmem:[#allocation5 + $0x30] sm:$0xff]  ;;  %s508_s9 = smov [#allocation9]   ;;  %s266_s13 = sshll.u32 %s563_s5, 4  ;;  %s267_s13 = int_to_ptr.hbm [resolvable:$true] %s266_s13 }
  0x10   :  { %v362_v1 = vld [vmem:[#allocation7 + $0x38] sm:$0xff]  ;;  %212 = vmatpush.bf16.msra.mxu1 %v354_v0  ;;  %v361_v3 = vld [vmem:[#allocation7 + $0x30] sm:$0xff]  ;;  %v352_v4 = vld [vmem:[#allocation5 + $0x28] sm:$0xff]  ;;  %s264_s10 = sshll.u32 %s508_s9, 4  ;;  %s255_s16 = sshll.u32 %s562_s4, 4  ;;  %s265_s10 = int_to_ptr.vmem [resolvable:$true] %s264_s10  ;;  %s256_s16 = int_to_ptr.hbm [resolvable:$true] %s255_s16 }
  0x11   :  { %147 = vmatpush.bf16.msra.mxu0 %v362_v1  ;;  %v360_v5 = vld [vmem:[#allocation7 + $0x28] sm:$0xff]  ;;  %v351_v6 = vld [vmem:[#allocation5 + $0x20] sm:$0xff]  ;;  %v350_v8 = vld [vmem:[#allocation5 + $0x18] sm:$0xff] }
  0x12   :  { %v359_v7 = vld [vmem:[#allocation7 + $0x20] sm:$0xff]  ;;  %v358_v9 = vld [vmem:[#allocation7 + $0x18] sm:$0xff]  ;;  %v349_v10 = vld [vmem:[#allocation5 + $0x10] sm:$0xff] }
  0x13   :  { %v357_v11 = vld [vmem:[#allocation7 + $0x10] sm:$0xff]  ;;  %v348_v12 = vld [vmem:[#allocation5 + $0x8] sm:$0xff]  ;;  %v347_v14 = vld [vmem:[#allocation5] sm:$0xff] }
  0x14   :  { %213 = vmatpush.bf16.msra.mxu1 %v353_v2  ;;  %v356_v13 = vld [vmem:[#allocation7 + $0x8] sm:$0xff]  ;;  %v355_v15 = vld [vmem:[#allocation7] sm:$0xff]  ;;  %v66_v16 = vld [vmem:[#allocation2] sm:$0xf] }
  0x15   :  { %148 = vmatpush.bf16.msra.mxu0 %v361_v3  ;;  %v370_v17 = vld [vmem:[%s561_s3] ss:$0 sm:$0xff]  ;;  %s509_s3 = smov [#allocation8]  }
  0x16   :  { %s253_s5 = sshll.u32 %s509_s3, 4  ;;  %s254_s5 = int_to_ptr.vmem [resolvable:$true] %s253_s5 }
  0x18   :  { %214 = vmatpush.bf16.msra.mxu1 %v352_v4 }
  0x19   :  { %149 = vmatpush.bf16.msra.mxu0 %v360_v5 }
  0x1c   :  { %215 = vmatpush.bf16.msra.mxu1 %v351_v6 }
  0x1d   :  { %150 = vmatpush.bf16.msra.mxu0 %v359_v7 }
  0x20   :  { %216 = vmatpush.bf16.msra.mxu1 %v350_v8 }
  0x21   :  { %151 = vmatpush.bf16.msra.mxu0 %v358_v9 }
  0x24   :  { %217 = vmatpush.bf16.msra.mxu1 %v349_v10 }
  0x25   :  { %152 = vmatpush.bf16.msra.mxu0 %v357_v11 }
  0x28   :  { %218 = vmatpush.bf16.msra.mxu1 %v348_v12 }
  0x29   :  { %153 = vmatpush.bf16.msra.mxu0 %v356_v13 }
  0x2c   :  { %219 = vmatpush.bf16.msra.mxu1 %v347_v14 }
  0x2d   :  { %154 = vmatpush.bf16.msra.mxu0 %v355_v15 }
  0x2f   :  { %220 = vmatmul.bf16.vlgmr.msra.gmra.mxu1 %v66_v16 }
  0x30   :  { %155 = vmatmul.bf16.vlgmr.msra.gmra.mxu0 %v66_v16 }
  0xac   :  { %v221_v18 = vpop.f32.mrf.mxu1 }
  0xad   :  { %v222_v19 = vadd.f32 %v370_v17, %v221_v18  ;;  %v156_v20 = vpop.f32.mrf.mxu0 }
  0xae   :  { %v245_v21 = vmax.f32 %v156_v20, -4.5 }
  0xaf   :  { %v346_v22 = vmul.f32 -1.442695, %v222_v19 }
  0xb0   :  { %v246_v23 = vmin.f32 %v245_v21, 0.0 }
  0xb1   :  { %371 = vpow2.f32 %v346_v22 }
  0xb2   :  { %247 = vst [vmem:[#allocation9] sm:$0xff] %v246_v23 }
  0xb3   :  { %269 = dma.vmem_to_hbm [thread:$0]  %s265_s10, 128, %s267_s13, [#allocation10]  }
  0xb4   :  { %v223_v24 = vpop.f32.mrf.mxu1 }
  0xb5   :  { %v158_v25 = vpop.f32.mrf.mxu0 }
  0xb7   :  { %v372_v26 = vpop.eup %371 }
  0xb8   :  { %v228_v27 = vadd.f32 1.0, %v372_v26 }
  0xba   :  { %373 = vrcp.f32 %v228_v27  ;;  %v240_v31 = vand.u32 2147483648, %v228_v27  ;;  %v238_v33 = vand.u32 2147483647, %v228_v27  ;;  %vm234_vm1 = vweird.f32 %v228_v27 }
  0xbc   :  { %v241_v35 = vor.u32 1.1754944e-38, %v240_v31  ;;  %vm239_vm3 = vcmp.eq.f32.partialorder %v238_v33, 8.507059e+37 }
  0xc0   :  { %v374_v28 = vpop.eup %373 }
  0xc1   :  { %v230_v29 = vmul.f32 %v374_v28, %v228_v27  ;;  %vm235_vm0 = vweird.f32 %v374_v28 }
  0xc2   :  { %vm236_vm2 = vmor %vm234_vm1, %vm235_vm0 }
  0xc3   :  { %v231_v30 = vsub.f32 1.0, %v230_v29 }
  0xc5   :  { %v232_v32 = vmul.f32 %v374_v28, %v231_v30 }
  0xc7   :  { %v233_v34 = vadd.f32 %v374_v28, %v232_v32 }
  0xc9   :  { %v237_v36 = vsel %vm236_vm2, %v374_v28, %v233_v34 }
  0xca   :  { %v242_v37 = vsel %vm239_vm3, %v241_v35, %v237_v36 }
  0xcb   :  { %244 = vst [vmem:[#allocation8] sm:$0xff] %v242_v37 }
  0xcc   :  { %258 = dma.vmem_to_hbm [thread:$0]  %s254_s5, 128, %s256_s16, [#allocation4]  }
  0xcd   :  { %499 = dma.done.wait [#allocation4], 128  }
  0xce   :  { %500 = vsyncadd [#allocation4], 4294967168 }
  0xcf   :  { %501 = dma.done.wait [#allocation10], 128  }
  0xd0   :  { %502 = vsyncadd [#allocation10], 4294967168 }
  0xd1   :  { %278 = vsyncpa [#allocation3], 1 }
  0xd2   :  { %279 = vsyncpa [#allocation6], 1 }
  0xd3   :  { %280 = vsyncpa [#allocation4], 1 }
  0xd4   :  { %281 = vsyncpa [#allocation10], 1 }

</bundles_post_ra>
